<compile_context>
chip_gen: v7x
topology: tpu7x:2x2x1
jax: 0.10.0
libtpu: 0.0.40
codegen_flags: <defaults>
</compile_context>

<pallas_src>
import functools

import jax
import jax.numpy as jnp
from jax import lax
from jax.experimental import pallas as pl
from jax.experimental.pallas import tpu as pltpu

_LANES = 128
_MAX_TILE_ROWS = 1024  # (1024, 128) f32 = 512 KiB per input per grid step


def _nnpu_partial_kernel(x_ref, t_ref, out_ref, *, tile_rows, valid_rows, needs_mask):
    """Per-tile raw partial sums for the NNPU loss.

    Writes into out_ref (an (8, 128) slab), at sublane 0:
      lane 0: sum(positive)                      (S_p)
      lane 1: sum(unlabeled)                     (S_u)
      lane 2: sum(sigmoid(-x) * positive)        (A)
      lane 3: sum(sigmoid(+x) * unlabeled)       (B)
    """
    x = x_ref[...].astype(jnp.float32)
    t = t_ref[...].astype(jnp.float32)

    if needs_mask:
        # Rows past the end of the (partial) last block hold undefined data:
        # zero both x and t there so they contribute nothing and stay finite.
        row = lax.broadcasted_iota(jnp.int32, (tile_rows, _LANES), 0)
        global_row = pl.program_id(0) * tile_rows + row
        valid = global_row < valid_rows
        x = jnp.where(valid, x, 0.0)
        t = jnp.where(valid, t, 0.0)

    positive = (t == 1.0).astype(jnp.float32)
    unlabeled = (t == -1.0).astype(jnp.float32)

    # One transcendental per element: sigmoid(-x) = 0.5*(1 - tanh(x/2)),
    # sigmoid(+x) = 1 - sigmoid(-x).
    th = jnp.tanh(0.5 * x)
    y_positive = 0.5 - 0.5 * th    # loss(input)  = sigmoid(-x)
    y_unlabeled = 0.5 + 0.5 * th   # loss(-input) = sigmoid(+x)

    s_p = jnp.sum(positive)
    s_u = jnp.sum(unlabeled)
    a = jnp.sum(y_positive * positive)
    b = jnp.sum(y_unlabeled * unlabeled)

    sub = lax.broadcasted_iota(jnp.int32, (8, _LANES), 0)
    lane = lax.broadcasted_iota(jnp.int32, (8, _LANES), 1)
    blk = jnp.zeros((8, _LANES), jnp.float32)
    for j, v in enumerate((s_p, s_u, a, b)):
        blk = blk + jnp.where((sub == 0) & (lane == j), v, 0.0)
    out_ref[...] = blk


def nnpu_loss(inp, target, *, prior, beta=0.0, gamma=1.0, nnPU=True):
    """Pallas implementation of NNPULoss.forward (returns x_out, a scalar)."""
    assert 0.0 < prior < 1.0
    prior = float(prior)
    beta = float(beta)
    gamma = float(gamma)

    # Keep native dtypes (bf16 logits etc. read at native width); upcast in-kernel.
    x = jnp.ravel(inp)
    t = jnp.ravel(target)
    assert x.shape == t.shape
    n = x.shape[0]

    pad = (-n) % _LANES
    if pad:
        # Only pad the final (<128-element) lane row; label 0.0 matches neither
        # +1 nor -1, so padded entries contribute nothing to any sum.
        x = jnp.pad(x, (0, pad))
        t = jnp.pad(t, (0, pad))
    rows = (n + pad) // _LANES
    x2 = x.reshape(rows, _LANES)
    t2 = t.reshape(rows, _LANES)

    tile_rows = rows if rows <= _MAX_TILE_ROWS else _MAX_TILE_ROWS
    num_tiles = pl.cdiv(rows, tile_rows)
    needs_mask = (rows % tile_rows) != 0

    kernel = functools.partial(
        _nnpu_partial_kernel,
        tile_rows=tile_rows,       # static Python ints -> no captured constants
        valid_rows=rows,
        needs_mask=needs_mask,
    )

    partials = pl.pallas_call(
        kernel,
        out_shape=jax.ShapeDtypeStruct((num_tiles, 8, _LANES), jnp.float32),
        grid=(num_tiles,),
        in_specs=[
            pl.BlockSpec((tile_rows, _LANES), lambda i: (i, 0)),
            pl.BlockSpec((tile_rows, _LANES), lambda i: (i, 0)),
        ],
        out_specs=pl.BlockSpec((None, 8, _LANES), lambda i: (i, 0, 0)),
        compiler_params=pltpu.CompilerParams(
            dimension_semantics=("parallel",),
        ),
    )(x2, t2)

    # Tiny cross-tile combine + normalization + nnPU branch (scalar JAX).
    sums = jnp.sum(partials[:, 0, :4], axis=0)
    s_p, s_u, a, b = sums[0], sums[1], sums[2], sums[3]

    n_positive = jnp.maximum(1.0, s_p)
    n_unlabeled = jnp.maximum(1.0, s_u)
    positive_risk = a / n_positive
    positive_risk_neg = (s_p - a) / n_positive     # sum(sigmoid(x)*positive)/n_pos
    unlabeled_risk = b / n_unlabeled
    negative_risk = unlabeled_risk - prior * positive_risk_neg
    plain = prior * positive_risk + negative_risk
    if nnPU:
        return jnp.where(negative_risk < -beta, -gamma * negative_risk, plain)
    return plain


def _nnpu_loss_ref(inp, target, *, prior, beta=0.0, gamma=1.0, nnPU=True):
    """Pure-JAX reference mirroring the PyTorch forward."""
    x = jnp.ravel(inp).astype(jnp.float32)
    t = jnp.ravel(target).astype(jnp.float32)
    positive = (t == 1.0).astype(jnp.float32)
    unlabeled = (t == -1.0).astype(jnp.float32)
    n_positive = jnp.maximum(1.0, jnp.sum(positive))
    n_unlabeled = jnp.maximum(1.0, jnp.sum(unlabeled))
    y_positive = jax.nn.sigmoid(-x)
    y_unlabeled = jax.nn.sigmoid(x)
    positive_risk = jnp.sum(y_positive * positive / n_positive)
    positive_risk_neg = jnp.sum(y_unlabeled * positive / n_positive)
    unlabeled_risk = jnp.sum(y_unlabeled * unlabeled / n_unlabeled)
    negative_risk = unlabeled_risk - prior * positive_risk_neg
    plain = prior * positive_risk + negative_risk
    if nnPU:
        return jnp.where(negative_risk < -beta, -gamma * negative_risk, plain)
    return plain


if __name__ == "__main__":
    key = jax.random.PRNGKey(0)
    kx, kt, kx2, kt2 = jax.random.split(key, 4)
    prior = 0.3

    # Test 1: small dense-prediction head, logits (B, C, H, W) = (2, 4, 16, 16).
    shape = (2, 4, 16, 16)
    logits = jax.random.normal(kx, shape, dtype=jnp.float32)
    labels = jnp.where(jax.random.uniform(kt, shape) < 0.3, 1.0, -1.0).astype(jnp.float32)
    out = jax.block_until_ready(nnpu_loss(logits, labels, prior=prior, beta=0.0, gamma=1.0, nnPU=True))
    ref = _nnpu_loss_ref(logits, labels, prior=prior, beta=0.0, gamma=1.0, nnPU=True)
    assert jnp.allclose(out, ref, atol=1e-5, rtol=1e-4), (out, ref)

    # Test 2: larger input exercising the multi-tile grid + ragged last tile.
    shape2 = (2, 4, 128, 130)   # 133120 elems -> 1040 rows -> 2 tiles, partial last block
    logits2 = jax.random.normal(kx2, shape2, dtype=jnp.float32)
    labels2 = jnp.where(jax.random.uniform(kt2, shape2) < 0.3, 1.0, -1.0).astype(jnp.float32)
    out2 = jax.block_until_ready(nnpu_loss(logits2, labels2, prior=prior, beta=0.0, gamma=1.0, nnPU=True))
    ref2 = _nnpu_loss_ref(logits2, labels2, prior=prior, beta=0.0, gamma=1.0, nnPU=True)
    assert jnp.allclose(out2, ref2, atol=1e-5, rtol=1e-4), (out2, ref2)

    print("KERNEL_OK")
</pallas_src>

<mosaic_0001>
module attributes {stable_mosaic.version = 11 : i64} {
  func.func @_nnpu_partial_kernel(%arg0: i32, %arg1: memref<16x128xf32, #tpu.memory_space<vmem>>, %arg2: memref<16x128xf32, #tpu.memory_space<vmem>>, %arg3: memref<1x8x128xf32, #tpu.memory_space<vmem>>) attributes {dimension_semantics = [#tpu.dimension_semantics<parallel>], iteration_bounds = array<i64: 1>, scalar_prefetch = 0 : i64, scratch_operands = 0 : i64, tpu.core_type = #tpu.core_type<tc>, window_params = [{transform_indices = @transform_0, window_bounds = array<i64: 16, 128>}, {transform_indices = @transform_1, window_bounds = array<i64: 16, 128>}, {transform_indices = @transform_2, window_bounds = array<i64: 1, 8, 128>}]} {
    %c0 = arith.constant 0 : index
    %c0_0 = arith.constant 0 : index
    %0 = vector.load %arg1[%c0, %c0_0] : memref<16x128xf32, #tpu.memory_space<vmem>>, vector<16x128xf32>
    %c0_1 = arith.constant 0 : index
    %c0_2 = arith.constant 0 : index
    %1 = vector.load %arg2[%c0_1, %c0_2] : memref<16x128xf32, #tpu.memory_space<vmem>>, vector<16x128xf32>
    %cst = arith.constant 1.000000e+00 : f32
    %2 = vector.broadcast %cst : f32 to vector<16x128xf32>
    %3 = arith.cmpf oeq, %1, %2 : vector<16x128xf32>
    %4 = arith.extui %3 : vector<16x128xi1> to vector<16x128xi32>
    %5 = arith.sitofp %4 : vector<16x128xi32> to vector<16x128xf32>
    %cst_3 = arith.constant -1.000000e+00 : f32
    %6 = vector.broadcast %cst_3 : f32 to vector<16x128xf32>
    %7 = arith.cmpf oeq, %1, %6 : vector<16x128xf32>
    %8 = arith.extui %7 : vector<16x128xi1> to vector<16x128xi32>
    %9 = arith.sitofp %8 : vector<16x128xi32> to vector<16x128xf32>
    %cst_4 = arith.constant 5.000000e-01 : f32
    %10 = vector.broadcast %cst_4 : f32 to vector<16x128xf32>
    %11 = arith.mulf %10, %0 : vector<16x128xf32>
    %12 = math.tanh %11 : vector<16x128xf32>
    %cst_5 = arith.constant 5.000000e-01 : f32
    %13 = vector.broadcast %cst_5 : f32 to vector<16x128xf32>
    %14 = arith.mulf %13, %12 : vector<16x128xf32>
    %cst_6 = arith.constant 5.000000e-01 : f32
    %15 = vector.broadcast %cst_6 : f32 to vector<16x128xf32>
    %16 = arith.subf %15, %14 : vector<16x128xf32>
    %cst_7 = arith.constant 5.000000e-01 : f32
    %17 = vector.broadcast %cst_7 : f32 to vector<16x128xf32>
    %18 = arith.mulf %17, %12 : vector<16x128xf32>
    %cst_8 = arith.constant 5.000000e-01 : f32
    %19 = vector.broadcast %cst_8 : f32 to vector<16x128xf32>
    %20 = arith.addf %19, %18 : vector<16x128xf32>
    %21 = vector.shape_cast %5 : vector<16x128xf32> to vector<1x16x128xf32>
    %cst_9 = arith.constant dense<0.000000e+00> : vector<1xf32>
    %22 = vector.multi_reduction <add>, %21, %cst_9 [1, 2] : vector<1x16x128xf32> to vector<1xf32>
    %23 = vector.shape_cast %22 : vector<1xf32> to vector<1x1x1xf32>
    %24 = vector.extract %23[0, 0, 0] : f32 from vector<1x1x1xf32>
    %25 = vector.shape_cast %9 : vector<16x128xf32> to vector<1x16x128xf32>
    %cst_10 = arith.constant dense<0.000000e+00> : vector<1xf32>
    %26 = vector.multi_reduction <add>, %25, %cst_10 [1, 2] : vector<1x16x128xf32> to vector<1xf32>
    %27 = vector.shape_cast %26 : vector<1xf32> to vector<1x1x1xf32>
    %28 = vector.extract %27[0, 0, 0] : f32 from vector<1x1x1xf32>
    %29 = arith.mulf %16, %5 : vector<16x128xf32>
    %30 = vector.shape_cast %29 : vector<16x128xf32> to vector<1x16x128xf32>
    %cst_11 = arith.constant dense<0.000000e+00> : vector<1xf32>
    %31 = vector.multi_reduction <add>, %30, %cst_11 [1, 2] : vector<1x16x128xf32> to vector<1xf32>
    %32 = vector.shape_cast %31 : vector<1xf32> to vector<1x1x1xf32>
    %33 = vector.extract %32[0, 0, 0] : f32 from vector<1x1x1xf32>
    %34 = arith.mulf %20, %9 : vector<16x128xf32>
    %35 = vector.shape_cast %34 : vector<16x128xf32> to vector<1x16x128xf32>
    %cst_12 = arith.constant dense<0.000000e+00> : vector<1xf32>
    %36 = vector.multi_reduction <add>, %35, %cst_12 [1, 2] : vector<1x16x128xf32> to vector<1xf32>
    %37 = vector.shape_cast %36 : vector<1xf32> to vector<1x1x1xf32>
    %38 = vector.extract %37[0, 0, 0] : f32 from vector<1x1x1xf32>
    %39 = tpu.iota {dimensions = array<i32: 0>} : vector<8x128xi32>
    %40 = tpu.iota {dimensions = array<i32: 1>} : vector<8x128xi32>
    %cst_13 = arith.constant 0.000000e+00 : f32
    %41 = vector.broadcast %cst_13 : f32 to vector<8x128xf32>
    %c0_i32 = arith.constant 0 : i32
    %42 = vector.broadcast %c0_i32 : i32 to vector<8x128xi32>
    %43 = arith.cmpi eq, %39, %42 : vector<8x128xi32>
    %c0_i32_14 = arith.constant 0 : i32
    %44 = vector.broadcast %c0_i32_14 : i32 to vector<8x128xi32>
    %45 = arith.cmpi eq, %40, %44 : vector<8x128xi32>
    %46 = arith.andi %43, %45 : vector<8x128xi1>
    %cst_15 = arith.constant 0.000000e+00 : f32
    %47 = vector.broadcast %24 : f32 to vector<8x128xf32>
    %48 = vector.broadcast %cst_15 : f32 to vector<8x128xf32>
    %49 = arith.select %46, %47, %48 : vector<8x128xi1>, vector<8x128xf32>
    %50 = arith.addf %41, %49 : vector<8x128xf32>
    %c0_i32_16 = arith.constant 0 : i32
    %51 = vector.broadcast %c0_i32_16 : i32 to vector<8x128xi32>
    %52 = arith.cmpi eq, %39, %51 : vector<8x128xi32>
    %c1_i32 = arith.constant 1 : i32
    %53 = vector.broadcast %c1_i32 : i32 to vector<8x128xi32>
    %54 = arith.cmpi eq, %40, %53 : vector<8x128xi32>
    %55 = arith.andi %52, %54 : vector<8x128xi1>
    %cst_17 = arith.constant 0.000000e+00 : f32
    %56 = vector.broadcast %28 : f32 to vector<8x128xf32>
    %57 = vector.broadcast %cst_17 : f32 to vector<8x128xf32>
    %58 = arith.select %55, %56, %57 : vector<8x128xi1>, vector<8x128xf32>
    %59 = arith.addf %50, %58 : vector<8x128xf32>
    %c0_i32_18 = arith.constant 0 : i32
    %60 = vector.broadcast %c0_i32_18 : i32 to vector<8x128xi32>
    %61 = arith.cmpi eq, %39, %60 : vector<8x128xi32>
    %c2_i32 = arith.constant 2 : i32
    %62 = vector.broadcast %c2_i32 : i32 to vector<8x128xi32>
    %63 = arith.cmpi eq, %40, %62 : vector<8x128xi32>
    %64 = arith.andi %61, %63 : vector<8x128xi1>
    %cst_19 = arith.constant 0.000000e+00 : f32
    %65 = vector.broadcast %33 : f32 to vector<8x128xf32>
    %66 = vector.broadcast %cst_19 : f32 to vector<8x128xf32>
    %67 = arith.select %64, %65, %66 : vector<8x128xi1>, vector<8x128xf32>
    %68 = arith.addf %59, %67 : vector<8x128xf32>
    %c0_i32_20 = arith.constant 0 : i32
    %69 = vector.broadcast %c0_i32_20 : i32 to vector<8x128xi32>
    %70 = arith.cmpi eq, %39, %69 : vector<8x128xi32>
    %c3_i32 = arith.constant 3 : i32
    %71 = vector.broadcast %c3_i32 : i32 to vector<8x128xi32>
    %72 = arith.cmpi eq, %40, %71 : vector<8x128xi32>
    %73 = arith.andi %70, %72 : vector<8x128xi1>
    %cst_21 = arith.constant 0.000000e+00 : f32
    %74 = vector.broadcast %38 : f32 to vector<8x128xf32>
    %75 = vector.broadcast %cst_21 : f32 to vector<8x128xf32>
    %76 = arith.select %73, %74, %75 : vector<8x128xi1>, vector<8x128xf32>
    %77 = arith.addf %68, %76 : vector<8x128xf32>
    %c0_22 = arith.constant 0 : index
    %c0_23 = arith.constant 0 : index
    %c0_24 = arith.constant 0 : index
    %78 = vector.load %arg3[%c0_22, %c0_23, %c0_24] : memref<1x8x128xf32, #tpu.memory_space<vmem>>, vector<1x8x128xf32>
    %79 = vector.shape_cast %78 : vector<1x8x128xf32> to vector<8x128xf32>
    %80 = vector.shape_cast %77 : vector<8x128xf32> to vector<1x8x128xf32>
    tpu.vector_store %arg3[%c0_22, %c0_23, %c0_24], %80 {strides = array<i32>} : memref<1x8x128xf32, #tpu.memory_space<vmem>>, vector<1x8x128xf32>,
    return
  }
  func.func @transform_0(%arg0: i32) -> (i32, i32) {
    %c0_i32 = arith.constant 0 : i32
    %c0_i32_0 = arith.constant 0 : i32
    return %arg0, %c0_i32 : i32, i32
  }
  func.func @transform_1(%arg0: i32) -> (i32, i32) {
    %c0_i32 = arith.constant 0 : i32
    %c0_i32_0 = arith.constant 0 : i32
    return %arg0, %c0_i32 : i32, i32
  }
  func.func @transform_2(%arg0: i32) -> (i32, i32, i32) {
    %c0_i32 = arith.constant 0 : i32
    %c0_i32_0 = arith.constant 0 : i32
    %c0_i32_1 = arith.constant 0 : i32
    return %arg0, %c0_i32, %c0_i32_0 : i32, i32, i32
  }
}

</mosaic_0001>

<bundles_post_ra>
// kernel: tpu_custom_call.1
= control target key start
LH: loop header
LB: loop body
LE: loop exit
PB: predicated region body
PF: predicated region fallthrough
CT: control target
= control target key end

     0   :  { %7 = vsyncpa [#allocation3], 0  ;;  %s307_s0 = inlined_call_operand.hbm [shape: f32[16,128], index: 0, kind: input, shape index: {}]   ;;  %s308_s1 = inlined_call_operand.hbm [shape: f32[16,128], index: 1, kind: input, shape index: {}]   ;;  %s309_s2 = inlined_call_operand.hbm [shape: f32[1,8,128], index: 2, kind: output, shape index: {}]  }
   0x1   :  { %8 = vsyncpa [#allocation6], 0 }
   0x2   :  { %9 = vsyncpa [#allocation4], 0  ;;  %s246_s9 = smov [#allocation2]   ;;  %s174_s13 = scalar_lea.hbm %s307_s0, 256 }
   0x3   :  { %s15_s10 = sshll.u32 %s246_s9, 4  ;;  %p175_p0 = scmp.ne.s32.totalorder %s307_s0, %s174_s13  ;;  %s16_s10 = int_to_ptr.vmem [resolvable:$true] %s15_s10 }
   0x4   :  { %p178_p1 = scmp.lt.u32.totalorder %s174_s13, %s307_s0 }
   0x6   :  { %p180_p2 = pnand %p178_p1, %p175_p0 }
   0x8   :  { %183 = shalt.err (!%p180_p2)
}
   0x9   :  { %s184_s18 = scalar_lea.vmem %s16_s10, 256  ;;  %p189_p4 = scmp.lt.s32.totalorder %s16_s10, %s16_s10 }
   0xa   :  { %p185_p3 = scmp.ne.s32.totalorder %s16_s10, %s184_s18  ;;  %p190_p5 = scmp.lt.s32.totalorder %s184_s18, %s184_s18 }
   0xc   :  { %p191_p6 = por %p190_p5, %p189_p4 }
   0xe   :  { %p192_p7 = pnand %p191_p6, %p185_p3 }
  0x10   :  { %195 = shalt.err (!%p192_p7)
}
  0x11   :  { %s247_s19 = smov 128   ;;  %s248_s20 = smov 8  }
  0x12   :  { %21 = dma.hbm_to_vmem [thread:$0]  %s307_s0, 256, %s16_s10, [#allocation3], %s247_s19, %s247_s19, %s248_s20  }
  0x13   :  { %s249_s23 = smov [#allocation5]   ;;  %s196_s27 = scalar_lea.hbm %s308_s1, 256 }
  0x14   :  { %s27_s24 = sshll.u32 %s249_s23, 4  ;;  %p197_p8 = scmp.ne.s32.totalorder %s308_s1, %s196_s27  ;;  %s28_s24 = int_to_ptr.vmem [resolvable:$true] %s27_s24 }
  0x15   :  { %p200_p9 = scmp.lt.u32.totalorder %s196_s27, %s308_s1 }
  0x17   :  { %p202_p10 = pnand %p200_p9, %p197_p8 }
  0x19   :  { %205 = shalt.err (!%p202_p10)
}
  0x1a   :  { %s206_s4 = scalar_lea.vmem %s28_s24, 256  ;;  %p211_p12 = scmp.lt.s32.totalorder %s28_s24, %s28_s24 }
  0x1b   :  { %p207_p11 = scmp.ne.s32.totalorder %s28_s24, %s206_s4  ;;  %p212_p13 = scmp.lt.s32.totalorder %s206_s4, %s206_s4 }
  0x1d   :  { %p213_p0 = por %p212_p13, %p211_p12 }
  0x1f   :  { %p214_p1 = pnand %p213_p0, %p207_p11 }
  0x21   :  { %217 = shalt.err (!%p214_p1)
}
  0x22   :  { %33 = dma.hbm_to_vmem [thread:$0]  %s308_s1, 256, %s28_s24, [#allocation6], %s247_s19, %s247_s19, %s248_s20  }
  0x23   :  { %240 = dma.done.wait [#allocation3], 256  }
  0x24   :  { %241 = vsyncadd [#allocation3], 4294967040 }
  0x25   :  { %242 = dma.done.wait [#allocation6], 256  }
  0x26   :  { %243 = vsyncadd [#allocation6], 4294967040  ;;  %v42_v0 = vld [vmem:[#allocation5] sm:$0xff]  ;;  %v43_v1 = vld [vmem:[#allocation5 + $0x8] sm:$0xff]  ;;  %v250_v4 = vmov 0.0   ;;  %v110_v55 = vlaneseq  ;;  %s251_s9 = smov [#allocation7]  }
  0x27   :  { %v40_v2 = vld [vmem:[#allocation2] sm:$0xff]  ;;  %vm44_vm0 = vcmp.eq.f32.partialorder %v42_v0, 1.0  ;;  %vm45_vm1 = vcmp.eq.f32.partialorder %v43_v1, 1.0  ;;  %vm50_vm2 = vcmp.eq.f32.partialorder %v42_v0, -1.0  ;;  %vm51_vm3 = vcmp.eq.f32.partialorder %v43_v1, -1.0  ;;  %v41_v3 = vld [vmem:[#allocation2 + $0x8] sm:$0xff] }
  0x28   :  { %v152_v5 = vsel %vm44_vm0, 1.0, %v250_v4  ;;  %v153_v6 = vsel %vm45_vm1, 1.0, %v250_v4  ;;  %v154_v7 = vsel %vm50_vm2, 1.0, %v250_v4  ;;  %v155_v8 = vsel %vm51_vm3, 1.0, %v250_v4  ;;  %s142_s10 = sshll.u32 %s251_s9, 4  ;;  %s143_s10 = int_to_ptr.vmem [resolvable:$true] %s142_s10 }
  0x29   :  { %v66_v9 = vadd.f32 %v153_v6, %v152_v5  ;;  %v56_v10 = vmul.f32 0.5, %v40_v2  ;;  %v57_v11 = vmul.f32 0.5, %v41_v3  ;;  %v76_v12 = vadd.f32 %v155_v8, %v154_v7  ;;  %s218_s11 = scalar_lea.vmem %s143_s10, 128  ;;  %p223_p3 = scmp.lt.s32.totalorder %s143_s10, %s143_s10 }
  0x2a   :  { %v111_v56 = vshrl.u32 %v110_v55, 7  ;;  %v113_v57 = vand.u32 127, %v110_v55  ;;  %p219_p2 = scmp.ne.s32.totalorder %s143_s10, %s218_s11  ;;  %p224_p4 = scmp.lt.s32.totalorder %s218_s11, %s218_s11 }
  0x2b   :  { %67 = vadd.xlane.f32.xlu0 %v66_v9  ;;  %170 = vtanh.f32 %v56_v10 }
  0x2c   :  { %172 = vtanh.f32 %v57_v11  ;;  %vm114_vm4 = vcmp.eq.s32.totalorder %v111_v56, 0  ;;  %vm115_vm5 = vcmp.eq.s32.totalorder %v113_v57, 0  ;;  %vm120_vm6 = vcmp.eq.s32.totalorder %v113_v57, 1  ;;  %p225_p5 = por %p224_p4, %p223_p3 }
  0x2d   :  { %vm116_vm7 = vmand %vm114_vm4, %vm115_vm5  ;;  %vm125_vm8 = vcmp.eq.s32.totalorder %v113_v57, 2  ;;  %vm130_vm11 = vcmp.eq.s32.totalorder %v113_v57, 3 }
  0x2e   :  { %vm121_vm9 = vmand %vm114_vm4, %vm120_vm6  ;;  %p226_p6 = pnand %p225_p5, %p219_p2 }
  0x2f   :  { %77 = vadd.xlane.f32.xlu0 %v76_v12  ;;  %vm126_vm10 = vmand %vm114_vm4, %vm125_vm8 }
  0x30   :  { %vm131_vm12 = vmand %vm114_vm4, %vm130_vm11 }
  0x35   :  { %v171_v13 = vpop.eup %170 }
  0x36   :  { %v173_v14 = vpop.eup %172  ;;  %v60_v15 = vmul.f32 0.5, %v171_v13 }
  0x37   :  { %v61_v16 = vmul.f32 0.5, %v173_v14 }
  0x38   :  { %v62_v17 = vsub.f32 0.5, %v60_v15  ;;  %v64_v18 = vadd.f32 0.5, %v60_v15 }
  0x39   :  { %v63_v19 = vsub.f32 0.5, %v61_v16  ;;  %v65_v20 = vadd.f32 0.5, %v61_v16 }
  0x3a   :  { %v86_v21 = vmul.f32 %v152_v5, %v62_v17  ;;  %v98_v23 = vmul.f32 %v154_v7, %v64_v18 }
  0x3b   :  { %v87_v22 = vmul.f32 %v153_v6, %v63_v19  ;;  %v99_v24 = vmul.f32 %v155_v8, %v65_v20 }
  0x3d   :  { %v88_v25 = vadd.f32 %v87_v22, %v86_v21  ;;  %v100_v26 = vadd.f32 %v99_v24, %v98_v23 }
  0x3f   :  { %89 = vadd.xlane.f32.xlu1 %v88_v25 }
  0x43   :  { %101 = vadd.xlane.f32.xlu1 %v100_v26 }
  0xb8   :  { %v68_v27 = vpop.xlane.xlu0 %67 }
  0xb9   :  { %v69_v28 = vrot.slane %v68_v27, 4 }
  0xbb   :  { %v70_v29 = vadd.f32 %v69_v28, %v68_v27 }
  0xbc   :  { %v78_v30 = vpop.xlane.xlu0 %77 }
  0xbd   :  { %v71_v31 = vrot.slane %v70_v29, 2  ;;  %v79_v32 = vrot.slane %v78_v30, 4 }
  0xbf   :  { %v80_v33 = vadd.f32 %v79_v32, %v78_v30  ;;  %v72_v34 = vadd.f32 %v71_v31, %v70_v29 }
  0xc1   :  { %v81_v35 = vrot.slane %v80_v33, 2  ;;  %v73_v36 = vrot.slane %v72_v34, 1 }
  0xc3   :  { %v82_v37 = vadd.f32 %v81_v35, %v80_v33  ;;  %v74_v38 = vadd.f32 %v73_v36, %v72_v34 }
  0xc5   :  { %156 = vpush %v74_v38  ;;  %v83_v39 = vrot.slane %v82_v37, 1 }
  0xc7   :  { %v84_v40 = vadd.f32 %v83_v39, %v82_v37 }
  0xc9   :  { %158 = vpush %v84_v40 }
  0xcc   :  { %v90_v41 = vpop.xlane.xlu1 %89 }
  0xcd   :  { %v91_v42 = vrot.slane %v90_v41, 4 }
  0xcf   :  { %v92_v43 = vadd.f32 %v91_v42, %v90_v41 }
  0xd0   :  { %v102_v44 = vpop.xlane.xlu1 %101 }
  0xd1   :  { %v93_v45 = vrot.slane %v92_v43, 2  ;;  %v103_v46 = vrot.slane %v102_v44, 4 }
  0xd3   :  { %v104_v47 = vadd.f32 %v103_v46, %v102_v44  ;;  %v94_v48 = vadd.f32 %v93_v45, %v92_v43 }
  0xd5   :  { %v105_v49 = vrot.slane %v104_v47, 2  ;;  %v95_v50 = vrot.slane %v94_v48, 1 }
  0xd7   :  { %v106_v51 = vadd.f32 %v105_v49, %v104_v47  ;;  %v96_v52 = vadd.f32 %v95_v50, %v94_v48 }
  0xd9   :  { %160 = vpush %v96_v52  ;;  %v107_v53 = vrot.slane %v106_v51, 1 }
  0xdb   :  { %v108_v54 = vadd.f32 %v107_v53, %v106_v51 }
  0xdd   :  { %162 = vpush %v108_v54 }
  0xf6   :  { %s157_s1 = spop %156 }
  0xf7   :  { %v117_v58 = vstv %s157_s1 }
  0xf8   :  { %v118_v60 = vsel %vm116_vm7, %v117_v58, 0.0 }
  0xfa   :  { %s159_s6 = spop %158 }
  0xfb   :  { %v122_v59 = vstv %s159_s6 }
  0xfc   :  { %v123_v61 = vsel %vm121_vm9, %v122_v59, 0.0 }
  0xfd   :  { %v124_v0 = vadd.f32 %v123_v61, %v118_v60 }
 0x10a   :  { %s161_s7 = spop %160 }
 0x10b   :  { %v127_v62 = vstv %s161_s7 }
 0x10c   :  { %v128_v63 = vsel %vm126_vm10, %v127_v62, 0.0 }
 0x10d   :  { %v129_v1 = vadd.f32 %v128_v63, %v124_v0 }
 0x10e   :  { %s163_s8 = spop %162 }
 0x10f   :  { %v132_v2 = vstv %s163_s8 }
 0x110   :  { %v133_v3 = vsel %vm131_vm12, %v132_v2, 0.0 }
 0x111   :  { %v134_v4 = vadd.f32 %v133_v3, %v129_v1 }
 0x113   :  { %135 = vst [vmem:[#allocation7] sm:$0xff] %v134_v4 }
 0x114   :  { %229 = shalt.err (!%p226_p6)
}
 0x115   :  { %s230_s14 = scalar_lea.hbm %s309_s2, 128 }
 0x116   :  { %p231_p7 = scmp.ne.s32.totalorder %s309_s2, %s230_s14  ;;  %p234_p8 = scmp.lt.u32.totalorder %s230_s14, %s309_s2 }
 0x118   :  { %p236_p9 = pnand %p234_p8, %p231_p7 }
 0x11a   :  { %239 = shalt.err (!%p236_p9)
}
 0x11b   :  { %145 = dma.vmem_to_hbm [thread:$0]  %s143_s10, 128, %s309_s2, [#allocation4]  }
 0x11c   :  { %244 = dma.done.wait [#allocation4], 128  }
 0x11d   :  { %245 = vsyncadd [#allocation4], 4294967168 }
 0x11e   :  { %149 = vsyncpa [#allocation3], 1 }
 0x11f   :  { %150 = vsyncpa [#allocation6], 1 }
 0x120   :  { %151 = vsyncpa [#allocation4], 1 }

</bundles_post_ra>
